<compile_context>
chip_gen: v5e
topology: v5e:2x2
jax: 0.10.0
libtpu: 0.0.40
codegen_flags: <defaults>
</compile_context>

<pallas_src>
import functools

import jax
import jax.numpy as jnp
from jax.experimental import pallas as pl
from jax.experimental.pallas import tpu as pltpu


def planar_compose_kernel(u_ref, w_ref, b_ref, uw_ref, x_ref, obs_ref,
                          out_ref, ld_ref, *, k):
    """Fused k planar-1d flows + summed log-det (pure VPU/EUP, no MXU)."""
    x = x_ref[...]                                   # (TB, TP)
    obs = obs_ref[...]                               # (TB, 1) column
    prod = jnp.ones_like(x)
    ld = None
    # k is a small static Python int -> unrolled; scalar params live in SMEM.
    for i in range(k):
        u = u_ref[i]
        w = w_ref[i]
        b = b_ref[i]
        uw = uw_ref[i]                               # precomputed u*w
        bo = b * obs                                 # (TB, 1), broadcasts below
        z1 = w * x + bo
        t1 = jnp.tanh(z1)
        x = x + u * t1
        # PyTorch quirk: log-det tanh is evaluated on the *updated* samples.
        # w*x_new + bo == z1 + (u*w)*t1, so reuse the pre-activation.
        t2 = jnp.tanh(z1 + uw * t1)
        prod = prod * jnp.abs(1.0 + uw * (1.0 - t2 * t2))
        # Flush deferred log periodically so the product cannot underflow /
        # lose precision when k is large or u*w approaches -1.
        if (i + 1) % 8 == 0 and (i + 1) < k:
            ld = jnp.log(prod) if ld is None else ld + jnp.log(prod)
            prod = jnp.ones_like(x)
    logp = jnp.log(prod)                             # one log per tile for k <= 8
    out_ref[...] = x
    ld_ref[...] = logp if ld is None else ld + logp


def planar_1d_compose(proposal_samples, observations, time, u, w, b,
                      *, tb=512, tp=2048):
    """JAX wrapper reproducing Planar_1d_compose.forward.

    proposal_samples: (B, P) float32
    observations:     (T, B) float32
    time:             python int (or traced scalar)
    u, w, b:          (k,) float32 per-flow scalar parameters
    Returns (proposal_samples, log_det), both (B, P).
    """
    B, P = proposal_samples.shape
    k = int(u.shape[0])
    dtype = proposal_samples.dtype

    # TODO(synk): time-slice kept as a tiny wrapper-side XLA slice; a
    # scalar-prefetch index_map on a (TB,1)-blocked obs array would violate
    # the (8,128) tiling rule.
    obs_t = observations[time].reshape(B, 1).astype(dtype)
    uw = (u * w).astype(dtype)

    # Minimum sublane granularity (bf16 needs 16-row tiles if we ever tile B).
    sublane = 16 if jnp.dtype(dtype) == jnp.dtype(jnp.bfloat16) else 8

    # Tile sizes: full dim if it fits, otherwise hardware-aligned tiles.
    TB = B if B <= tb else tb          # tb is a multiple of 16 (covers bf16 too)
    TP = P if P <= tp else tp          # tp is a multiple of 128

    # v7x megacore: if the whole problem is a single block, split a parallel
    # axis so both TensorCores get work (only when alignment allows it).
    if pl.cdiv(B, TB) * pl.cdiv(P, TP) == 1:
        if P >= 256:
            TP = max(128, ((P // 2) // 128) * 128)
        elif B >= 2 * sublane:
            TB = max(sublane, ((B // 2) // sublane) * sublane)

    grid = (pl.cdiv(B, TB), pl.cdiv(P, TP))

    kern = functools.partial(planar_compose_kernel, k=k)
    out, ld = pl.pallas_call(
        kern,
        out_shape=(
            jax.ShapeDtypeStruct((B, P), dtype),
            jax.ShapeDtypeStruct((B, P), dtype),
        ),
        grid_spec=pltpu.PrefetchScalarGridSpec(
            num_scalar_prefetch=0,
            grid=grid,
            in_specs=[
                pl.BlockSpec(memory_space=pltpu.MemorySpace.SMEM),   # u   (k,)
                pl.BlockSpec(memory_space=pltpu.MemorySpace.SMEM),   # w   (k,)
                pl.BlockSpec(memory_space=pltpu.MemorySpace.SMEM),   # b   (k,)
                pl.BlockSpec(memory_space=pltpu.MemorySpace.SMEM),   # u*w (k,)
                pl.BlockSpec((TB, TP), lambda i, j: (i, j)),          # samples
                pl.BlockSpec((TB, 1), lambda i, j: (i, 0)),           # obs column
            ],
            out_specs=(
                pl.BlockSpec((TB, TP), lambda i, j: (i, j)),
                pl.BlockSpec((TB, TP), lambda i, j: (i, j)),
            ),
        ),
        # Write updated samples in place over the input samples buffer.
        input_output_aliases={4: 0},
        compiler_params=pltpu.CompilerParams(
            dimension_semantics=("parallel", "parallel"),
            # Explicit limit: v5e scoped default is only 16 MiB; v7x physical
            # VMEM is 64 MiB, so keep double-buffered tiles (~24 MiB) under 32.
            vmem_limit_bytes=32 * 1024 * 1024,
        ),
    )(u.astype(dtype), w.astype(dtype), b.astype(dtype), uw,
      proposal_samples, obs_t)
    return out, ld


def planar_1d_compose_ref(proposal_samples, observations, time, u, w, b):
    """Pure-JAX reference mirroring the PyTorch module exactly."""
    B, P = proposal_samples.shape
    obs = jnp.broadcast_to(observations[time].reshape(B, 1), (B, P))
    x = proposal_samples
    ld = jnp.zeros_like(x)
    for i in range(u.shape[0]):
        x = x + u[i] * jnp.tanh(w[i] * x + b[i] * obs)
        t = jnp.tanh(w[i] * x + b[i] * obs)
        ld = ld + jnp.log(jnp.abs(1.0 + u[i] * w[i] * (1.0 - t ** 2)))
    return x, ld


if __name__ == "__main__":
    key = jax.random.PRNGKey(0)
    k_flows = 3
    B, P, T = 8, 128, 8
    time = 3

    k1, k2, k3, k4, k5 = jax.random.split(key, 5)
    # Parameters: init.uniform_(param, 0.0, 0.25) for each of the k flows.
    u = jax.random.uniform(k1, (k_flows,), jnp.float32, 0.0, 0.25)
    w = jax.random.uniform(k2, (k_flows,), jnp.float32, 0.0, 0.25)
    b = jax.random.uniform(k3, (k_flows,), jnp.float32, 0.0, 0.25)

    proposal_samples = jax.random.normal(k4, (B, P), jnp.float32)
    observations = jax.random.normal(k5, (T, B), jnp.float32)

    out, ld = planar_1d_compose(proposal_samples, observations, time, u, w, b)
    out = jax.block_until_ready(out)
    ld = jax.block_until_ready(ld)

    out_ref, ld_ref = planar_1d_compose_ref(
        proposal_samples, observations, time, u, w, b)
    assert jnp.allclose(out, out_ref, atol=1e-5, rtol=1e-5)
    assert jnp.allclose(ld, ld_ref, atol=1e-5, rtol=1e-5)

    print("KERNEL_OK")
</pallas_src>

<mosaic_0001>
module attributes {stable_mosaic.version = 11 : i64} {
  func.func @planar_compose_kernel(%arg0: i32, %arg1: i32, %arg2: memref<3xf32, #tpu.memory_space<smem>>, %arg3: memref<3xf32, #tpu.memory_space<smem>>, %arg4: memref<3xf32, #tpu.memory_space<smem>>, %arg5: memref<3xf32, #tpu.memory_space<smem>>, %arg6: memref<8x128xf32, #tpu.memory_space<vmem>>, %arg7: memref<8x1xf32, #tpu.memory_space<vmem>>, %arg8: memref<8x128xf32, #tpu.memory_space<vmem>>, %arg9: memref<8x128xf32, #tpu.memory_space<vmem>>) attributes {dimension_semantics = [#tpu.dimension_semantics<parallel>, #tpu.dimension_semantics<parallel>], iteration_bounds = array<i64: 1, 1>, scalar_prefetch = 0 : i64, scratch_operands = 0 : i64, tpu.core_type = #tpu.core_type<tc>, window_params = [{transform_indices = @transform_0, window_bounds = array<i64: 3>}, {transform_indices = @transform_1, window_bounds = array<i64: 3>}, {transform_indices = @transform_2, window_bounds = array<i64: 3>}, {transform_indices = @transform_3, window_bounds = array<i64: 3>}, {transform_indices = @transform_4, window_bounds = array<i64: 8, 128>}, {transform_indices = @transform_5, window_bounds = array<i64: 8, 1>}, {transform_indices = @transform_6, window_bounds = array<i64: 8, 128>}, {transform_indices = @transform_7, window_bounds = array<i64: 8, 128>}]} {
    %c0 = arith.constant 0 : index
    %c0_0 = arith.constant 0 : index
    %0 = vector.load %arg6[%c0, %c0_0] : memref<8x128xf32, #tpu.memory_space<vmem>>, vector<8x128xf32>
    %c0_1 = arith.constant 0 : index
    %c0_2 = arith.constant 0 : index
    %1 = vector.load %arg7[%c0_1, %c0_2] : memref<8x1xf32, #tpu.memory_space<vmem>>, vector<8x1xf32>
    %cst = arith.constant 1.000000e+00 : f32
    %2 = vector.broadcast %cst : f32 to vector<8x128xf32>
    %c0_3 = arith.constant 0 : index
    %3 = memref.load %arg2[%c0_3] : memref<3xf32, #tpu.memory_space<smem>>
    %c0_4 = arith.constant 0 : index
    %4 = memref.load %arg3[%c0_4] : memref<3xf32, #tpu.memory_space<smem>>
    %c0_5 = arith.constant 0 : index
    %5 = memref.load %arg4[%c0_5] : memref<3xf32, #tpu.memory_space<smem>>
    %c0_6 = arith.constant 0 : index
    %6 = memref.load %arg5[%c0_6] : memref<3xf32, #tpu.memory_space<smem>>
    %7 = vector.broadcast %5 : f32 to vector<8x1xf32>
    %8 = arith.mulf %7, %1 : vector<8x1xf32>
    %9 = vector.broadcast %4 : f32 to vector<8x128xf32>
    %10 = arith.mulf %9, %0 : vector<8x128xf32>
    %11 = vector.broadcast %8 : vector<8x1xf32> to vector<8x128xf32>
    %12 = arith.addf %10, %11 : vector<8x128xf32>
    %13 = math.tanh %12 : vector<8x128xf32>
    %14 = vector.broadcast %3 : f32 to vector<8x128xf32>
    %15 = arith.mulf %14, %13 : vector<8x128xf32>
    %16 = arith.addf %0, %15 : vector<8x128xf32>
    %17 = vector.broadcast %6 : f32 to vector<8x128xf32>
    %18 = arith.mulf %17, %13 : vector<8x128xf32>
    %19 = arith.addf %12, %18 : vector<8x128xf32>
    %20 = math.tanh %19 : vector<8x128xf32>
    %21 = arith.mulf %20, %20 : vector<8x128xf32>
    %cst_7 = arith.constant 1.000000e+00 : f32
    %22 = vector.broadcast %cst_7 : f32 to vector<8x128xf32>
    %23 = arith.subf %22, %21 : vector<8x128xf32>
    %24 = vector.broadcast %6 : f32 to vector<8x128xf32>
    %25 = arith.mulf %24, %23 : vector<8x128xf32>
    %cst_8 = arith.constant 1.000000e+00 : f32
    %26 = vector.broadcast %cst_8 : f32 to vector<8x128xf32>
    %27 = arith.addf %26, %25 : vector<8x128xf32>
    %28 = math.absf %27 : vector<8x128xf32>
    %29 = arith.mulf %2, %28 : vector<8x128xf32>
    %c1 = arith.constant 1 : index
    %30 = memref.load %arg2[%c1] : memref<3xf32, #tpu.memory_space<smem>>
    %c1_9 = arith.constant 1 : index
    %31 = memref.load %arg3[%c1_9] : memref<3xf32, #tpu.memory_space<smem>>
    %c1_10 = arith.constant 1 : index
    %32 = memref.load %arg4[%c1_10] : memref<3xf32, #tpu.memory_space<smem>>
    %c1_11 = arith.constant 1 : index
    %33 = memref.load %arg5[%c1_11] : memref<3xf32, #tpu.memory_space<smem>>
    %34 = vector.broadcast %32 : f32 to vector<8x1xf32>
    %35 = arith.mulf %34, %1 : vector<8x1xf32>
    %36 = vector.broadcast %31 : f32 to vector<8x128xf32>
    %37 = arith.mulf %36, %16 : vector<8x128xf32>
    %38 = vector.broadcast %35 : vector<8x1xf32> to vector<8x128xf32>
    %39 = arith.addf %37, %38 : vector<8x128xf32>
    %40 = math.tanh %39 : vector<8x128xf32>
    %41 = vector.broadcast %30 : f32 to vector<8x128xf32>
    %42 = arith.mulf %41, %40 : vector<8x128xf32>
    %43 = arith.addf %16, %42 : vector<8x128xf32>
    %44 = vector.broadcast %33 : f32 to vector<8x128xf32>
    %45 = arith.mulf %44, %40 : vector<8x128xf32>
    %46 = arith.addf %39, %45 : vector<8x128xf32>
    %47 = math.tanh %46 : vector<8x128xf32>
    %48 = arith.mulf %47, %47 : vector<8x128xf32>
    %cst_12 = arith.constant 1.000000e+00 : f32
    %49 = vector.broadcast %cst_12 : f32 to vector<8x128xf32>
    %50 = arith.subf %49, %48 : vector<8x128xf32>
    %51 = vector.broadcast %33 : f32 to vector<8x128xf32>
    %52 = arith.mulf %51, %50 : vector<8x128xf32>
    %cst_13 = arith.constant 1.000000e+00 : f32
    %53 = vector.broadcast %cst_13 : f32 to vector<8x128xf32>
    %54 = arith.addf %53, %52 : vector<8x128xf32>
    %55 = math.absf %54 : vector<8x128xf32>
    %56 = arith.mulf %29, %55 : vector<8x128xf32>
    %c2 = arith.constant 2 : index
    %57 = memref.load %arg2[%c2] : memref<3xf32, #tpu.memory_space<smem>>
    %c2_14 = arith.constant 2 : index
    %58 = memref.load %arg3[%c2_14] : memref<3xf32, #tpu.memory_space<smem>>
    %c2_15 = arith.constant 2 : index
    %59 = memref.load %arg4[%c2_15] : memref<3xf32, #tpu.memory_space<smem>>
    %c2_16 = arith.constant 2 : index
    %60 = memref.load %arg5[%c2_16] : memref<3xf32, #tpu.memory_space<smem>>
    %61 = vector.broadcast %59 : f32 to vector<8x1xf32>
    %62 = arith.mulf %61, %1 : vector<8x1xf32>
    %63 = vector.broadcast %58 : f32 to vector<8x128xf32>
    %64 = arith.mulf %63, %43 : vector<8x128xf32>
    %65 = vector.broadcast %62 : vector<8x1xf32> to vector<8x128xf32>
    %66 = arith.addf %64, %65 : vector<8x128xf32>
    %67 = math.tanh %66 : vector<8x128xf32>
    %68 = vector.broadcast %57 : f32 to vector<8x128xf32>
    %69 = arith.mulf %68, %67 : vector<8x128xf32>
    %70 = arith.addf %43, %69 : vector<8x128xf32>
    %71 = vector.broadcast %60 : f32 to vector<8x128xf32>
    %72 = arith.mulf %71, %67 : vector<8x128xf32>
    %73 = arith.addf %66, %72 : vector<8x128xf32>
    %74 = math.tanh %73 : vector<8x128xf32>
    %75 = arith.mulf %74, %74 : vector<8x128xf32>
    %cst_17 = arith.constant 1.000000e+00 : f32
    %76 = vector.broadcast %cst_17 : f32 to vector<8x128xf32>
    %77 = arith.subf %76, %75 : vector<8x128xf32>
    %78 = vector.broadcast %60 : f32 to vector<8x128xf32>
    %79 = arith.mulf %78, %77 : vector<8x128xf32>
    %cst_18 = arith.constant 1.000000e+00 : f32
    %80 = vector.broadcast %cst_18 : f32 to vector<8x128xf32>
    %81 = arith.addf %80, %79 : vector<8x128xf32>
    %82 = math.absf %81 : vector<8x128xf32>
    %83 = arith.mulf %56, %82 : vector<8x128xf32>
    %84 = math.log %83 : vector<8x128xf32>
    %c0_19 = arith.constant 0 : index
    %c0_20 = arith.constant 0 : index
    %85 = vector.load %arg8[%c0_19, %c0_20] : memref<8x128xf32, #tpu.memory_space<vmem>>, vector<8x128xf32>
    tpu.vector_store %arg8[%c0_19, %c0_20], %70 {strides = array<i32>} : memref<8x128xf32, #tpu.memory_space<vmem>>, vector<8x128xf32>,
    %c0_21 = arith.constant 0 : index
    %c0_22 = arith.constant 0 : index
    %86 = vector.load %arg9[%c0_21, %c0_22] : memref<8x128xf32, #tpu.memory_space<vmem>>, vector<8x128xf32>
    tpu.vector_store %arg9[%c0_21, %c0_22], %84 {strides = array<i32>} : memref<8x128xf32, #tpu.memory_space<vmem>>, vector<8x128xf32>,
    return
  }
  func.func @transform_0(%arg0: i32, %arg1: i32) -> i32 {
    %c0_i32 = arith.constant 0 : i32
    %c0_i32_0 = arith.constant 0 : i32
    return %c0_i32 : i32
  }
  func.func @transform_1(%arg0: i32, %arg1: i32) -> i32 {
    %c0_i32 = arith.constant 0 : i32
    %c0_i32_0 = arith.constant 0 : i32
    return %c0_i32 : i32
  }
  func.func @transform_2(%arg0: i32, %arg1: i32) -> i32 {
    %c0_i32 = arith.constant 0 : i32
    %c0_i32_0 = arith.constant 0 : i32
    return %c0_i32 : i32
  }
  func.func @transform_3(%arg0: i32, %arg1: i32) -> i32 {
    %c0_i32 = arith.constant 0 : i32
    %c0_i32_0 = arith.constant 0 : i32
    return %c0_i32 : i32
  }
  func.func @transform_4(%arg0: i32, %arg1: i32) -> (i32, i32) {
    %c0_i32 = arith.constant 0 : i32
    return %arg0, %arg1 : i32, i32
  }
  func.func @transform_5(%arg0: i32, %arg1: i32) -> (i32, i32) {
    %c0_i32 = arith.constant 0 : i32
    %c0_i32_0 = arith.constant 0 : i32
    return %arg0, %c0_i32 : i32, i32
  }
  func.func @transform_6(%arg0: i32, %arg1: i32) -> (i32, i32) {
    %c0_i32 = arith.constant 0 : i32
    return %arg0, %arg1 : i32, i32
  }
  func.func @transform_7(%arg0: i32, %arg1: i32) -> (i32, i32) {
    %c0_i32 = arith.constant 0 : i32
    return %arg0, %arg1 : i32, i32
  }
}

</mosaic_0001>

<bundles_post_ra>
// kernel: tpu_custom_call.1
= control target key start
LH: loop header
LB: loop body
LE: loop exit
PB: predicated region body
PF: predicated region fallthrough
CT: control target
= control target key end

     0   :  { %13 = vsyncpa [#allocation5], 0  ;;  %s459_s0 = inlined_call_operand.vmem [shape: f32[3], index: 0, kind: input, shape index: {}]   ;;  %s460_s1 = inlined_call_operand.vmem [shape: f32[3], index: 1, kind: input, shape index: {}]   ;;  %s461_s2 = inlined_call_operand.vmem [shape: f32[3], index: 2, kind: input, shape index: {}]   ;;  %s462_s3 = inlined_call_operand.vmem [shape: f32[3], index: 3, kind: input, shape index: {}]   ;;  %s463_s4 = inlined_call_operand.hbm [shape: f32[8,128], index: 4, kind: input, shape index: {}, may-alias: {4,6}]   ;;  %s464_s5 = inlined_call_operand.vmem [shape: f32[8,1], index: 5, kind: input, shape index: {}]   ;;  %s465_s6 = inlined_call_operand.hbm [shape: f32[8,128], index: 6, kind: output, shape index: {0}, may-alias: {4,6}]   ;;  %s466_s7 = inlined_call_operand.hbm [shape: f32[8,128], index: 7, kind: output, shape index: {1}]  }
   0x1   :  { %14 = vsyncpa [#allocation7], 0 }
   0x2   :  { %15 = vsyncpa [#allocation10], 0 }
   0x3   :  { %16 = vsyncpa [#allocation3], 0 }
   0x4   :  { %17 = vsyncpa [#allocation4], 0  ;;  %s33_s26 = sshll.u32 %s460_s1, 4  ;;  %s34_s26 = int_to_ptr.vmem [resolvable:$true] %s33_s26 }
   0x5   :  { %18 = vsyncpa [#allocation14], 0  ;;  %s24_s29 = sshll.u32 %s459_s0, 4  ;;  %s378_s30 = smov [#allocation6]   ;;  %s25_s29 = int_to_ptr.vmem [resolvable:$true] %s24_s29 }
   0x6   :  { %36 = dma.vmem_to_smem %s34_s26, 16, %s378_s30, [#allocation7]  }
   0x7   :  { %s379_s8 = smov [#allocation2]   ;;  %s42_s11 = sshll.u32 %s461_s2, 4  ;;  %s43_s11 = int_to_ptr.vmem [resolvable:$true] %s42_s11 }
   0x8   :  { %27 = dma.vmem_to_smem %s25_s29, 16, %s379_s8, [#allocation5]  }
   0x9   :  { %s51_s1 = sshll.u32 %s462_s3, 4  ;;  %s380_s14 = smov [#allocation8]   ;;  %s52_s1 = int_to_ptr.vmem [resolvable:$true] %s51_s1 }
   0xa   :  { %45 = dma.vmem_to_smem %s43_s11, 16, %s380_s14, [#allocation7]  }
   0xb   :  { %s381_s15 = smov [#allocation9]   ;;  %s60_s17 = sshll.u32 %s463_s4, 4  ;;  %s61_s17 = int_to_ptr.hbm [resolvable:$true] %s60_s17 }
   0xc   :  { %54 = dma.vmem_to_smem %s52_s1, 16, %s381_s15, [#allocation10]  }
   0xd   :  { %s382_s18 = smov [#allocation11]  }
   0xe   :  { %s62_s19 = sshll.u32 %s382_s18, 4  ;;  %s63_s19 = int_to_ptr.vmem [resolvable:$true] %s62_s19 }
   0xf   :  { %65 = dma.hbm_to_vmem [thread:$0]  %s61_s17, 128, %s63_s19, [#allocation3]  }
  0x10   :  { %366 = dma.done.wait [#allocation5], 16  }
  0x11   :  { %367 = vsyncadd [#allocation5], 4294967280 }
  0x12   :  { %368 = dma.done.wait [#allocation7], 32  }
  0x13   :  { %369 = vsyncadd [#allocation7], 4294967264 }
  0x14   :  { %370 = dma.done.wait [#allocation10], 16  }
  0x15   :  { %371 = vsyncadd [#allocation10], 4294967280 }
  0x16   :  { %372 = dma.done.wait [#allocation3], 128  }
  0x17   :  { %373 = vsyncadd [#allocation3], 4294967168 }
  0x18   :  { %88 = sfence }
  0x19   :  { %s93_s2 = sld [smem:[#allocation8]]  ;;  %v383_v0 = vmov 0   ;;  %v90_v1 = vld [vmem:[%s464_s5] sm:$0xff]  ;;  %s384_s30 = smov [#allocation12]  }
  0x1a   :  { %230 = vset.pattern.permute.xlu0 %v383_v0  ;;  %s216_s3 = sld [smem:[#allocation8 + $0x1]]  ;;  %231 = vset.pattern.permute.xlu1 %v383_v0  ;;  %v89_v9 = vld [vmem:[#allocation11] sm:$0xff]  ;;  %s183_s8 = sshll.u32 %s384_s30, 4  ;;  %s184_s8 = int_to_ptr.vmem [resolvable:$true] %s183_s8 }
  0x1b   :  { %s220_s4 = sld [smem:[#allocation8 + $0x2]]  ;;  %s185_s11 = sshll.u32 %s465_s6, 4  ;;  %s186_s11 = int_to_ptr.hbm [resolvable:$true] %s185_s11 }
  0x1c   :  { %s92_s22 = sld [smem:[#allocation6]]  ;;  %s385_s6 = smov [#allocation13]  }
  0x1d   :  { %s91_s23 = sld [smem:[#allocation2]]  ;;  %s194_s12 = sshll.u32 %s385_s6, 4  ;;  %s195_s12 = int_to_ptr.vmem [resolvable:$true] %s194_s12 }
  0x1e   :  { %s215_s24 = sld [smem:[#allocation6 + $0x1]]  ;;  %s196_s14 = sshll.u32 %s466_s7, 4  ;;  %s197_s14 = int_to_ptr.hbm [resolvable:$true] %s196_s14 }
  0x1f   :  { %v95_v2 = vstv %s93_s2  ;;  %s444_s5 = sld [smem:[#allocation9]] }
  0x20   :  { %v96_v3 = vmul.f32 %v95_v2, %v90_v1  ;;  %v122_v6 = vstv %s216_s3  ;;  %s446_s25 = sld [smem:[#allocation9 + $0x1]] }
  0x21   :  { %v150_v4 = vstv %s220_s4  ;;  %v123_v7 = vmul.f32 %v122_v6, %v90_v1  ;;  %s214_s26 = sld [smem:[#allocation2 + $0x1]] }
  0x22   :  { %101 = vperm.xlu0 %230, %v96_v3   ;;  %v151_v5 = vmul.f32 %v150_v4, %v90_v1  ;;  %v97_v8 = vstv %s92_s22  ;;  %s219_s27 = sld [smem:[#allocation6 + $0x2]] }
  0x23   :  { %v98_v10 = vmul.f32 %v97_v8, %v89_v9  ;;  %v106_v13 = vstv %s91_s23  ;;  %s450_s28 = sld [smem:[#allocation9 + $0x2]] }
  0x24   :  { %156 = vperm.xlu1 %231, %v151_v5   ;;  %v124_v16 = vstv %s215_s24  ;;  %s218_s29 = sld [smem:[#allocation2 + $0x2]] }
  0x25   :  { %v109_v21 = vstv %s444_s5 }
  0x26   :  { %v136_v22 = vstv %s446_s25 }
  0x27   :  { %v133_v23 = vstv %s214_s26 }
  0x28   :  { %v152_v28 = vstv %s219_s27 }
  0x29   :  { %v164_v36 = vstv %s450_s28 }
  0x2a   :  { %128 = vperm.xlu0 %230, %v123_v7   ;;  %v161_v37 = vstv %s218_s29 }
  0x94   :  { %v102_v11 = vpop.permute.xlu0 %101 }
  0x95   :  { %v104_v12 = vadd.f32 %v102_v11, %v98_v10 }
  0x96   :  { %v157_v32 = vpop.permute.xlu1 %156 }
  0x97   :  { %232 = vtanh.f32 %v104_v12 }
  0x9c   :  { %v129_v19 = vpop.permute.xlu0 %128 }
  0x9d   :  { %v233_v14 = vpop.eup %232 }
  0x9e   :  { %v107_v15 = vmul.f32 %v233_v14, %v106_v13  ;;  %v110_v25 = vmul.f32 %v233_v14, %v109_v21 }
  0xa0   :  { %v108_v17 = vadd.f32 %v107_v15, %v89_v9  ;;  %v111_v31 = vadd.f32 %v110_v25, %v104_v12 }
  0xa2   :  { %v125_v18 = vmul.f32 %v124_v16, %v108_v17 }
  0xa4   :  { %v131_v20 = vadd.f32 %v129_v19, %v125_v18 }
  0xa6   :  { %234 = vtanh.f32 %v131_v20 }
  0xac   :  { %v235_v24 = vpop.eup %234 }
  0xad   :  { %v137_v26 = vmul.f32 %v235_v24, %v136_v22  ;;  %v134_v27 = vmul.f32 %v235_v24, %v133_v23 }
  0xaf   :  { %v138_v29 = vadd.f32 %v137_v26, %v131_v20  ;;  %v135_v30 = vadd.f32 %v134_v27, %v108_v17 }
  0xb1   :  { %v153_v33 = vmul.f32 %v152_v28, %v135_v30  ;;  %236 = vtanh.f32 %v138_v29 }
  0xb2   :  { %238 = vtanh.f32 %v111_v31 }
  0xb3   :  { %v159_v34 = vadd.f32 %v157_v32, %v153_v33 }
  0xb5   :  { %240 = vtanh.f32 %v159_v34 }
  0xb7   :  { %v237_v35 = vpop.eup %236 }
  0xb8   :  { %v239_v38 = vpop.eup %238  ;;  %v140_v40 = vmul.f32 %v237_v35, %v237_v35 }
  0xb9   :  { %v113_v43 = vmul.f32 %v239_v38, %v239_v38 }
  0xba   :  { %v141_v46 = vsub.f32 1.0, %v140_v40 }
  0xbb   :  { %v241_v39 = vpop.eup %240  ;;  %v114_v47 = vsub.f32 1.0, %v113_v43 }
  0xbc   :  { %v165_v41 = vmul.f32 %v241_v39, %v164_v36  ;;  %v162_v42 = vmul.f32 %v241_v39, %v161_v37  ;;  %v142_v48 = vmul.f32 %v141_v46, %v136_v22 }
  0xbd   :  { %v115_v49 = vmul.f32 %v114_v47, %v109_v21 }
  0xbe   :  { %v166_v44 = vadd.f32 %v165_v41, %v159_v34  ;;  %v163_v45 = vadd.f32 %v162_v42, %v135_v30  ;;  %v143_v51 = vadd.f32 1.0, %v142_v48 }
  0xbf   :  { %v116_v53 = vadd.f32 1.0, %v115_v49 }
  0xc0   :  { %242 = vtanh.f32 %v166_v44  ;;  %176 = vst [vmem:[#allocation12] sm:$0xff] %v163_v45  ;;  %v144_v55 = vand.u32 2147483647, %v143_v51 }
  0xc1   :  { %188 = dma.vmem_to_hbm [thread:$0]  %s184_s8, 128, %s186_s11, [#allocation4]   ;;  %v117_v57 = vand.u32 2147483647, %v116_v53 }
  0xc3   :  { %v145_v59 = vmul.f32 %v144_v55, %v117_v57 }
  0xc6   :  { %v243_v50 = vpop.eup %242 }
  0xc7   :  { %v168_v52 = vmul.f32 %v243_v50, %v243_v50 }
  0xc9   :  { %v169_v54 = vsub.f32 1.0, %v168_v52 }
  0xcb   :  { %v170_v56 = vmul.f32 %v169_v54, %v164_v36 }
  0xcd   :  { %v171_v58 = vadd.f32 1.0, %v170_v56 }
  0xcf   :  { %v172_v60 = vand.u32 2147483647, %v171_v58 }
  0xd1   :  { %v173_v61 = vmul.f32 %v172_v60, %v145_v59 }
  0xd3   :  { %244 = vlog2.f32 %v173_v61 }
  0xd9   :  { %v245_v62 = vpop.eup %244 }
  0xda   :  { %v175_v63 = vmul.f32 0.6931472, %v245_v62 }
  0xdc   :  { %177 = vst [vmem:[#allocation13] sm:$0xff] %v175_v63 }
  0xdd   :  { %199 = dma.vmem_to_hbm [thread:$0]  %s195_s12, 128, %s197_s14, [#allocation14]  }
  0xde   :  { %374 = dma.done.wait [#allocation4], 128  }
  0xdf   :  { %375 = vsyncadd [#allocation4], 4294967168 }
  0xe0   :  { %376 = dma.done.wait [#allocation14], 128  }
  0xe1   :  { %377 = vsyncadd [#allocation14], 4294967168 }
  0xe2   :  { %208 = vsyncpa [#allocation3], 1 }
  0xe3   :  { %209 = vsyncpa [#allocation4], 1 }
  0xe4   :  { %210 = vsyncpa [#allocation14], 1 }
  0xe5   :  { %211 = vsyncpa [#allocation5], 1 }
  0xe6   :  { %212 = vsyncpa [#allocation7], 1 }
  0xe7   :  { %213 = vsyncpa [#allocation10], 1 }

</bundles_post_ra>
